<compile_context>
chip_gen: v5e
topology: v5e:2x2
jax: 0.10.0
libtpu: 0.0.40
codegen_flags: <defaults>
</compile_context>

<pallas_src>
import jax
import jax.numpy as jnp
from jax.experimental import pallas as pl
from jax.experimental.pallas import tpu as pltpu


_NEG_FILL = -1000000000.0  # matches masked_fill(mask == 0, -1e9)


def _masked_softmax_kernel(x_ref, m_ref, o_ref):
    # x_ref, m_ref, o_ref: (tile_rows, D) blocks in VMEM; softmax over axis -1.
    x = x_ref[...].astype(jnp.float32)
    m = m_ref[...]

    x_masked = jnp.where(m == 0, jnp.float32(_NEG_FILL), x)

    row_max = jnp.max(x_masked, axis=-1, keepdims=True)          # (tile, 1)
    e = jnp.exp(x_masked - row_max)                               # EUP
    denom = jnp.sum(e, axis=-1, keepdims=True)                    # (tile, 1)
    inv = pl.reciprocal(denom)            # one reciprocal per row, not per elem
    o_ref[...] = (e * inv).astype(o_ref.dtype)


def _pick_row_tile(num_rows, d, dtype_bytes=4,
                   budget_bytes=8 * 1024 * 1024):
    """Largest row tile (multiple of 8, divides R) within a VMEM budget.

    Budget counts x/mask/out tiles double-buffered plus fp32 temporaries
    (~8 tile-sized buffers), using the lane-padded width (>=128), so the same
    choice is safe on v7x's 64 MiB VMEM as well as v5e/v6e's 128 MiB.
    """
    padded_d = max(d, 128)
    max_rows = max(budget_bytes // (8 * padded_d * dtype_bytes), 8)
    max_rows = int(min(max_rows, 1024, num_rows))
    for tm in range(max_rows - (max_rows % 8), 7, -8):
        if num_rows % tm == 0:
            return tm
    # Fallback: single block covering all rows (block dim == full array dim).
    return num_rows


def masked_softmax(x, mask, dim):
    """Pallas masked softmax: softmax(where(mask==0, -1e9, x), axis=dim)."""
    nd = x.ndim
    dim = dim % nd

    # Align mask rank with x (PyTorch right-aligned broadcasting).
    if mask.ndim < nd:
        mask = mask.reshape((1,) * (nd - mask.ndim) + mask.shape)

    # Move the softmax axis to the lane (last) axis; no-op when dim == -1.
    if dim != nd - 1:
        x = jnp.moveaxis(x, dim, -1)
        mask = jnp.moveaxis(mask, dim, -1)

    # Only materialize a broadcast if the mask is genuinely smaller than x
    # (zero cost when shapes already match, as in the demo below).
    if mask.shape != x.shape:
        mask = jnp.broadcast_to(mask, x.shape)

    *lead, d = x.shape
    num_rows = 1
    for s in lead:
        num_rows *= s

    x2 = x.reshape(num_rows, d)
    m2 = mask.reshape(num_rows, d)

    tile_rows = _pick_row_tile(num_rows, d, dtype_bytes=x.dtype.itemsize)
    grid = (num_rows // tile_rows,)

    out2 = pl.pallas_call(
        _masked_softmax_kernel,
        out_shape=jax.ShapeDtypeStruct((num_rows, d), x.dtype),
        grid_spec=pltpu.PrefetchScalarGridSpec(
            num_scalar_prefetch=0,
            grid=grid,
            in_specs=[
                pl.BlockSpec((tile_rows, d), lambda i: (i, 0)),
                pl.BlockSpec((tile_rows, d), lambda i: (i, 0)),
            ],
            out_specs=pl.BlockSpec((tile_rows, d), lambda i: (i, 0)),
        ),
        compiler_params=pltpu.CompilerParams(
            # Rows are independent -> shard across v7x's 2 TensorCores.
            dimension_semantics=("parallel",),
            vmem_limit_bytes=32 * 1024 * 1024,
        ),
    )(x2, m2)

    out = out2.reshape(x.shape)
    if dim != nd - 1:
        out = jnp.moveaxis(out, -1, dim)
    return out


def _reference(x, mask, dim):
    # Pure-JAX mirror of the PyTorch forward.
    x_masked = jnp.where(mask == 0, jnp.float32(_NEG_FILL), x.astype(jnp.float32))
    return jax.nn.softmax(x_masked, axis=dim)


if __name__ == "__main__":
    key = jax.random.PRNGKey(0)
    N, C, H, W = 2, 4, 16, 16
    dim = -1  # MaskedSoftmax(dim) — softmax over the last (spatial) axis.

    kx, km = jax.random.split(key)
    x = jax.random.normal(kx, (N, C, H, W), dtype=jnp.float32)
    mask = (jax.random.uniform(km, (N, C, H, W)) > 0.3).astype(jnp.float32)

    out = masked_softmax(x, mask, dim)
    jax.block_until_ready(out)

    ref = _reference(x, mask, dim)
    assert out.shape == x.shape
    assert jnp.allclose(out, ref, atol=1e-5, rtol=1e-5), "mismatch vs reference"
    # Sanity: each softmax row sums to 1 (fully masked rows are uniform, still sum to 1).
    assert jnp.allclose(out.sum(axis=dim), 1.0, atol=1e-4)

    print("KERNEL_OK")
</pallas_src>

<mosaic_0001>
module attributes {stable_mosaic.version = 11 : i64} {
  func.func @_masked_softmax_kernel(%arg0: i32, %arg1: memref<128x16xf32, #tpu.memory_space<vmem>>, %arg2: memref<128x16xf32, #tpu.memory_space<vmem>>, %arg3: memref<128x16xf32, #tpu.memory_space<vmem>>) attributes {dimension_semantics = [#tpu.dimension_semantics<parallel>], iteration_bounds = array<i64: 1>, scalar_prefetch = 0 : i64, scratch_operands = 0 : i64, tpu.core_type = #tpu.core_type<tc>, window_params = [{transform_indices = @transform_0, window_bounds = array<i64: 128, 16>}, {transform_indices = @transform_1, window_bounds = array<i64: 128, 16>}, {transform_indices = @transform_2, window_bounds = array<i64: 128, 16>}]} {
    %c0 = arith.constant 0 : index
    %c0_0 = arith.constant 0 : index
    %0 = vector.load %arg1[%c0, %c0_0] : memref<128x16xf32, #tpu.memory_space<vmem>>, vector<128x16xf32>
    %c0_1 = arith.constant 0 : index
    %c0_2 = arith.constant 0 : index
    %1 = vector.load %arg2[%c0_1, %c0_2] : memref<128x16xf32, #tpu.memory_space<vmem>>, vector<128x16xf32>
    %cst = arith.constant 0.000000e+00 : f32
    %2 = vector.broadcast %cst : f32 to vector<128x16xf32>
    %3 = arith.cmpf oeq, %1, %2 : vector<128x16xf32>
    %cst_3 = arith.constant -1.000000e+09 : f32
    %4 = vector.broadcast %cst_3 : f32 to vector<128x16xf32>
    %5 = arith.select %3, %4, %0 : vector<128x16xi1>, vector<128x16xf32>
    %cst_4 = arith.constant dense<0xFF800000> : vector<128xf32>
    %6 = vector.multi_reduction <maximumf>, %5, %cst_4 [1] : vector<128x16xf32> to vector<128xf32>
    %7 = vector.shape_cast %6 : vector<128xf32> to vector<128x1xf32>
    %8 = vector.broadcast %7 : vector<128x1xf32> to vector<128x16xf32>
    %9 = arith.subf %5, %8 : vector<128x16xf32>
    %10 = math.exp %9 : vector<128x16xf32>
    %cst_5 = arith.constant dense<0.000000e+00> : vector<128xf32>
    %11 = vector.multi_reduction <add>, %10, %cst_5 [1] : vector<128x16xf32> to vector<128xf32>
    %12 = vector.shape_cast %11 : vector<128xf32> to vector<128x1xf32>
    %13 = tpu.reciprocal %12 : vector<128x1xf32> -> vector<128x1xf32>
    %14 = vector.broadcast %13 : vector<128x1xf32> to vector<128x16xf32>
    %15 = arith.mulf %10, %14 : vector<128x16xf32>
    %c0_6 = arith.constant 0 : index
    %c0_7 = arith.constant 0 : index
    %16 = vector.load %arg3[%c0_6, %c0_7] : memref<128x16xf32, #tpu.memory_space<vmem>>, vector<128x16xf32>
    tpu.vector_store %arg3[%c0_6, %c0_7], %15 {strides = array<i32>} : memref<128x16xf32, #tpu.memory_space<vmem>>, vector<128x16xf32>,
    return
  }
  func.func @transform_0(%arg0: i32) -> (i32, i32) {
    %c0_i32 = arith.constant 0 : i32
    %c0_i32_0 = arith.constant 0 : i32
    return %arg0, %c0_i32 : i32, i32
  }
  func.func @transform_1(%arg0: i32) -> (i32, i32) {
    %c0_i32 = arith.constant 0 : i32
    %c0_i32_0 = arith.constant 0 : i32
    return %arg0, %c0_i32 : i32, i32
  }
  func.func @transform_2(%arg0: i32) -> (i32, i32) {
    %c0_i32 = arith.constant 0 : i32
    %c0_i32_0 = arith.constant 0 : i32
    return %arg0, %c0_i32 : i32, i32
  }
}

</mosaic_0001>

<bundles_post_ra>
// kernel: tpu_custom_call.1
= control target key start
LH: loop header
LB: loop body
LE: loop exit
PB: predicated region body
PF: predicated region fallthrough
CT: control target
= control target key end

     0   :  { %vm75_vm0 = vcmask 130048   ;;  %s1060_s0 = inlined_call_operand.vmem [shape: f32[128,16], index: 0, kind: input, shape index: {}]   ;;  %s1061_s1 = inlined_call_operand.vmem [shape: f32[128,16], index: 1, kind: input, shape index: {}]   ;;  %s1062_s2 = inlined_call_operand.vmem [shape: f32[128,16], index: 2, kind: output, shape index: {}]  }
   0x1   :  { %v15_v0 = vld [vmem:[%s1060_s0 + $0x20] sm:$0xff]  ;;  %v13_v2 = vld [vmem:[%s1060_s0 + $0x10] sm:$0xff]  ;;  %v16_v7 = vld [vmem:[%s1060_s0 + $0x28] sm:$0xff] }
   0x2   :  { %v31_v1 = vld [vmem:[%s1061_s1 + $0x20] sm:$0xff]  ;;  %v29_v3 = vld [vmem:[%s1061_s1 + $0x10] sm:$0xff]  ;;  %v32_v8 = vld [vmem:[%s1061_s1 + $0x28] sm:$0xff] }
   0x3   :  { %vm47_vm1 = vcmp.eq.f32.partialorder %v31_v1, 0.0  ;;  %v11_v4 = vld [vmem:[%s1060_s0] sm:$0xff]  ;;  %vm45_vm2 = vcmp.eq.f32.partialorder %v29_v3, 0.0  ;;  %vm48_vm4 = vcmp.eq.f32.partialorder %v32_v8, 0.0  ;;  %v14_v14 = vld [vmem:[%s1060_s0 + $0x18] sm:$0xff]  ;;  %v12_v16 = vld [vmem:[%s1060_s0 + $0x8] sm:$0xff] }
   0x4   :  { %v27_v5 = vld [vmem:[%s1061_s1] sm:$0xff]  ;;  %v577_v6 = vsel %vm47_vm1, -1e+09, %v15_v0  ;;  %v587_v10 = vsel %vm45_vm2, -1e+09, %v13_v2  ;;  %v30_v15 = vld [vmem:[%s1061_s1 + $0x18] sm:$0xff] }
   0x5   :  { %vm43_vm3 = vcmp.eq.f32.partialorder %v27_v5, 0.0  ;;  %v88_v9 = vsel %vm75_vm0, %v577_v6, -inf  ;;  %v82_v12 = vsel %vm75_vm0, %v587_v10, -inf  ;;  %vm46_vm5 = vcmp.eq.f32.partialorder %v30_v15, 0.0  ;;  %v28_v17 = vld [vmem:[%s1061_s1 + $0x8] sm:$0xff]  ;;  %v35_v21 = vld [vmem:[%s1061_s1 + $0x40] sm:$0xff] }
   0x6   :  { %v589_v11 = vsel %vm43_vm3, -1e+09, %v11_v4  ;;  %89 = vmax.xlane.f32.xlu2 %v88_v9  ;;  %83 = vmax.xlane.f32.xlu1 %v82_v12  ;;  %v607_v18 = vsel %vm48_vm4, -1e+09, %v16_v7  ;;  %vm44_vm6 = vcmp.eq.f32.partialorder %v28_v17, 0.0  ;;  %v33_v23 = vld [vmem:[%s1061_s1 + $0x30] sm:$0xff] }
   0x7   :  { %v76_v13 = vsel %vm75_vm0, %v589_v11, -inf  ;;  %v609_v19 = vsel %vm46_vm5, -1e+09, %v14_v14  ;;  %v611_v20 = vsel %vm44_vm6, -1e+09, %v12_v16  ;;  %v91_v22 = vsel %vm75_vm0, %v607_v18, -inf }
   0x8   :  { %77 = vmax.xlane.f32.xlu0 %v76_v13  ;;  %v34_v24 = vld [vmem:[%s1061_s1 + $0x38] sm:$0xff]  ;;  %v85_v25 = vsel %vm75_vm0, %v609_v19, -inf  ;;  %v79_v26 = vsel %vm75_vm0, %v611_v20, -inf  ;;  %v19_v27 = vld [vmem:[%s1060_s0 + $0x40] sm:$0xff]  ;;  %vm51_vm7 = vcmp.eq.f32.partialorder %v35_v21, 0.0  ;;  %v17_v28 = vld [vmem:[%s1060_s0 + $0x30] sm:$0xff] }
   0x9   :  { %vm49_vm8 = vcmp.eq.f32.partialorder %v33_v23, 0.0  ;;  %v18_v29 = vld [vmem:[%s1060_s0 + $0x38] sm:$0xff]  ;;  %vm50_vm9 = vcmp.eq.f32.partialorder %v34_v24, 0.0  ;;  %v637_v30 = vsel %vm51_vm7, -1e+09, %v19_v27  ;;  %v36_v35 = vld [vmem:[%s1061_s1 + $0x48] sm:$0xff] }
   0xa   :  { %v639_v31 = vsel %vm49_vm8, -1e+09, %v17_v28  ;;  %v641_v32 = vsel %vm50_vm9, -1e+09, %v18_v29  ;;  %v38_v33 = vld [vmem:[%s1061_s1 + $0x58] sm:$0xff]  ;;  %v100_v34 = vsel %vm75_vm0, %v637_v30, -inf }
   0xb   :  { %v37_v36 = vld [vmem:[%s1061_s1 + $0x50] sm:$0xff]  ;;  %v94_v37 = vsel %vm75_vm0, %v639_v31, -inf  ;;  %v97_v38 = vsel %vm75_vm0, %v641_v32, -inf  ;;  %v22_v39 = vld [vmem:[%s1060_s0 + $0x58] sm:$0xff]  ;;  %vm54_vm10 = vcmp.eq.f32.partialorder %v38_v33, 0.0  ;;  %v20_v40 = vld [vmem:[%s1060_s0 + $0x48] sm:$0xff] }
   0xc   :  { %vm52_vm11 = vcmp.eq.f32.partialorder %v36_v35, 0.0  ;;  %v21_v41 = vld [vmem:[%s1060_s0 + $0x50] sm:$0xff]  ;;  %vm53_vm12 = vcmp.eq.f32.partialorder %v37_v36, 0.0  ;;  %v667_v42 = vsel %vm54_vm10, -1e+09, %v22_v39  ;;  %v39_v47 = vld [vmem:[%s1061_s1 + $0x60] sm:$0xff] }
   0xd   :  { %v669_v43 = vsel %vm52_vm11, -1e+09, %v20_v40  ;;  %v671_v44 = vsel %vm53_vm12, -1e+09, %v21_v41  ;;  %v41_v45 = vld [vmem:[%s1061_s1 + $0x70] sm:$0xff]  ;;  %v109_v46 = vsel %vm75_vm0, %v667_v42, -inf }
   0xe   :  { %92 = vmax.xlane.f32.xlu2 %v91_v22  ;;  %86 = vmax.xlane.f32.xlu1 %v85_v25  ;;  %v40_v48 = vld [vmem:[%s1061_s1 + $0x68] sm:$0xff]  ;;  %v103_v49 = vsel %vm75_vm0, %v669_v43, -inf  ;;  %v106_v50 = vsel %vm75_vm0, %v671_v44, -inf  ;;  %v25_v51 = vld [vmem:[%s1060_s0 + $0x70] sm:$0xff]  ;;  %vm57_vm13 = vcmp.eq.f32.partialorder %v41_v45, 0.0  ;;  %v23_v52 = vld [vmem:[%s1060_s0 + $0x60] sm:$0xff] }
   0xf   :  { %vm55_vm14 = vcmp.eq.f32.partialorder %v39_v47, 0.0  ;;  %v24_v53 = vld [vmem:[%s1060_s0 + $0x68] sm:$0xff]  ;;  %vm56_vm15 = vcmp.eq.f32.partialorder %v40_v48, 0.0  ;;  %v697_v54 = vsel %vm57_vm13, -1e+09, %v25_v51  ;;  %v42_v58 = vld [vmem:[%s1061_s1 + $0x78] sm:$0xff] }
  0x10   :  { %80 = vmax.xlane.f32.xlu0 %v79_v26  ;;  %v699_v55 = vsel %vm55_vm14, -1e+09, %v23_v52  ;;  %v701_v56 = vsel %vm56_vm15, -1e+09, %v24_v53  ;;  %v118_v57 = vsel %vm75_vm0, %v697_v54, -inf  ;;  %v26_v61 = vld [vmem:[%s1060_s0 + $0x78] sm:$0xff] }
  0x11   :  { %v112_v59 = vsel %vm75_vm0, %v699_v55, -inf  ;;  %v115_v60 = vsel %vm75_vm0, %v701_v56, -inf  ;;  %vm58_vm1 = vcmp.eq.f32.partialorder %v42_v58, 0.0 }
  0x12   :  { %v715_v62 = vsel %vm58_vm1, -1e+09, %v26_v61 }
  0x13   :  { %v121_v63 = vsel %vm75_vm0, %v715_v62, -inf }
  0x16   :  { %101 = vmax.xlane.f32.xlu2 %v100_v34  ;;  %98 = vmax.xlane.f32.xlu1 %v97_v38 }
  0x18   :  { %95 = vmax.xlane.f32.xlu0 %v94_v37 }
  0x1e   :  { %110 = vmax.xlane.f32.xlu2 %v109_v46  ;;  %107 = vmax.xlane.f32.xlu1 %v106_v50 }
  0x20   :  { %104 = vmax.xlane.f32.xlu0 %v103_v49 }
  0x26   :  { %119 = vmax.xlane.f32.xlu2 %v118_v57  ;;  %116 = vmax.xlane.f32.xlu1 %v115_v60 }
  0x28   :  { %113 = vmax.xlane.f32.xlu0 %v112_v59 }
  0x30   :  { %122 = vmax.xlane.f32.xlu0 %v121_v63 }
  0x79   :  { %v90_v0 = vpop.xlane.xlu2 %89  ;;  %v84_v1 = vpop.xlane.xlu1 %83 }
  0x7a   :  { %v126_v3 = vsub.f32 %v587_v10, %v84_v1  ;;  %v128_v10 = vsub.f32 %v577_v6, %v90_v0 }
  0x7b   :  { %v78_v2 = vpop.xlane.xlu0 %77 }
  0x7c   :  { %v124_v4 = vsub.f32 %v589_v11, %v78_v2  ;;  %v144_v5 = vmul.f32 1.442695, %v126_v3 }
  0x7e   :  { %v140_v7 = vmul.f32 1.442695, %v124_v4  ;;  %480 = vpow2.f32 %v144_v5 }
  0x80   :  { %482 = vpow2.f32 %v140_v7 }
  0x81   :  { %v93_v8 = vpop.xlane.xlu2 %92  ;;  %v87_v12 = vpop.xlane.xlu1 %86 }
  0x82   :  { %v129_v9 = vsub.f32 %v607_v18, %v93_v8  ;;  %v127_v14 = vsub.f32 %v609_v19, %v87_v12  ;;  %v148_v19 = vmul.f32 1.442695, %v128_v10 }
  0x83   :  { %v81_v13 = vpop.xlane.xlu0 %80 }
  0x84   :  { %v125_v15 = vsub.f32 %v611_v20, %v81_v13  ;;  %v150_v16 = vmul.f32 1.442695, %v129_v9  ;;  %v724_v17 = vpop.eup %480  ;;  %v146_v21 = vmul.f32 1.442695, %v127_v14 }
  0x85   :  { %v178_v23 = vsel %vm75_vm0, %v724_v17, 0.0 }
  0x86   :  { %v142_v11 = vmul.f32 1.442695, %v125_v15  ;;  %v727_v22 = vpop.eup %482  ;;  %484 = vpow2.f32 %v150_v16  ;;  %179 = vadd.xlane.f32.xlu0 %v178_v23 }
  0x87   :  { %486 = vpow2.f32 %v146_v21  ;;  %v172_v18 = vsel %vm75_vm0, %v727_v22, 0.0 }
  0x88   :  { %488 = vpow2.f32 %v142_v11  ;;  %173 = vadd.xlane.f32.xlu1 %v172_v18 }
  0x89   :  { %v102_v20 = vpop.xlane.xlu2 %101  ;;  %v99_v25 = vpop.xlane.xlu1 %98  ;;  %490 = vpow2.f32 %v148_v19 }
  0x8a   :  { %v132_v24 = vsub.f32 %v637_v30, %v102_v20  ;;  %v131_v29 = vsub.f32 %v641_v32, %v99_v25 }
  0x8b   :  { %v96_v6 = vpop.xlane.xlu0 %95 }
  0x8c   :  { %v130_v26 = vsub.f32 %v639_v31, %v96_v6  ;;  %v735_v27 = vpop.eup %484  ;;  %v156_v28 = vmul.f32 1.442695, %v132_v24  ;;  %v154_v32 = vmul.f32 1.442695, %v131_v29 }
  0x8d   :  { %v738_v33 = vpop.eup %486  ;;  %v187_v35 = vsel %vm75_vm0, %v735_v27, 0.0 }
  0x8e   :  { %v152_v34 = vmul.f32 1.442695, %v130_v26  ;;  %v742_v36 = vpop.eup %488  ;;  %492 = vpow2.f32 %v156_v28  ;;  %v181_v30 = vsel %vm75_vm0, %v738_v33, 0.0  ;;  %188 = vadd.xlane.f32.xlu0 %v187_v35 }
  0x8f   :  { %v175_v31 = vsel %vm75_vm0, %v742_v36, 0.0  ;;  %v749_v41 = vpop.eup %490 }
  0x90   :  { %494 = vpow2.f32 %v152_v34  ;;  %182 = vadd.xlane.f32.xlu1 %v181_v30  ;;  %176 = vadd.xlane.f32.xlu2 %v175_v31 }
  0x91   :  { %v111_v37 = vpop.xlane.xlu2 %110  ;;  %v108_v40 = vpop.xlane.xlu1 %107  ;;  %496 = vpow2.f32 %v154_v32 }
  0x92   :  { %v135_v38 = vsub.f32 %v667_v42, %v111_v37  ;;  %v134_v48 = vsub.f32 %v671_v44, %v108_v40 }
  0x93   :  { %v105_v39 = vpop.xlane.xlu0 %104 }
  0x94   :  { %v133_v45 = vsub.f32 %v669_v43, %v105_v39  ;;  %v752_v46 = vpop.eup %492  ;;  %v162_v47 = vmul.f32 1.442695, %v135_v38  ;;  %v184_v43 = vsel %vm75_vm0, %v749_v41, 0.0  ;;  %v160_v52 = vmul.f32 1.442695, %v134_v48 }
  0x95   :  { %v196_v51 = vsel %vm75_vm0, %v752_v46, 0.0 }
  0x96   :  { %v755_v49 = vpop.eup %494  ;;  %v158_v50 = vmul.f32 1.442695, %v133_v45  ;;  %498 = vpow2.f32 %v162_v47  ;;  %197 = vadd.xlane.f32.xlu0 %v196_v51 }
  0x97   :  { %v190_v42 = vsel %vm75_vm0, %v755_v49, 0.0  ;;  %v763_v44 = vpop.eup %496 }
  0x98   :  { %500 = vpow2.f32 %v158_v50  ;;  %185 = vadd.xlane.f32.xlu2 %v184_v43  ;;  %191 = vadd.xlane.f32.xlu1 %v190_v42  ;;  %v193_v4 = vsel %vm75_vm0, %v763_v44, 0.0 }
  0x99   :  { %v120_v53 = vpop.xlane.xlu2 %119  ;;  %v117_v59 = vpop.xlane.xlu1 %116  ;;  %502 = vpow2.f32 %v160_v52 }
  0x9a   :  { %v138_v57 = vsub.f32 %v697_v54, %v120_v53  ;;  %v137_v0 = vsub.f32 %v701_v56, %v117_v59 }
  0x9b   :  { %v114_v58 = vpop.xlane.xlu0 %113 }
  0x9c   :  { %v136_v60 = vsub.f32 %v699_v55, %v114_v58  ;;  %v767_v61 = vpop.eup %498  ;;  %v168_v63 = vmul.f32 1.442695, %v138_v57  ;;  %v166_v55 = vmul.f32 1.442695, %v137_v0 }
  0x9d   :  { %v205_v3 = vsel %vm75_vm0, %v767_v61, 0.0 }
  0x9e   :  { %v770_v1 = vpop.eup %500  ;;  %v164_v2 = vmul.f32 1.442695, %v136_v60  ;;  %504 = vpow2.f32 %v168_v63  ;;  %206 = vadd.xlane.f32.xlu0 %v205_v3 }
  0x9f   :  { %v199_v54 = vsel %vm75_vm0, %v770_v1, 0.0  ;;  %v778_v5 = vpop.eup %502 }
  0xa0   :  { %506 = vpow2.f32 %v164_v2  ;;  %194 = vadd.xlane.f32.xlu2 %v193_v4  ;;  %200 = vadd.xlane.f32.xlu1 %v199_v54  ;;  %v202_v14 = vsel %vm75_vm0, %v778_v5, 0.0 }
  0xa1   :  { %508 = vpow2.f32 %v166_v55 }
  0xa3   :  { %v123_v56 = vpop.xlane.xlu0 %122 }
  0xa4   :  { %v139_v7 = vsub.f32 %v715_v62, %v123_v56  ;;  %v781_v8 = vpop.eup %504 }
  0xa5   :  { %v214_v13 = vsel %vm75_vm0, %v781_v8, 0.0 }
  0xa6   :  { %v783_v9 = vpop.eup %506  ;;  %v170_v12 = vmul.f32 1.442695, %v139_v7  ;;  %215 = vadd.xlane.f32.xlu0 %v214_v13 }
  0xa7   :  { %v208_v15 = vsel %vm75_vm0, %v783_v9, 0.0  ;;  %v791_v62 = vpop.eup %508 }
  0xa8   :  { %510 = vpow2.f32 %v170_v12  ;;  %203 = vadd.xlane.f32.xlu2 %v202_v14  ;;  %209 = vadd.xlane.f32.xlu1 %v208_v15  ;;  %v211_v10 = vsel %vm75_vm0, %v791_v62, 0.0 }
  0xae   :  { %v793_v16 = vpop.eup %510 }
  0xaf   :  { %v217_v21 = vsel %vm75_vm0, %v793_v16, 0.0 }
  0xb0   :  { %212 = vadd.xlane.f32.xlu2 %v211_v10  ;;  %218 = vadd.xlane.f32.xlu1 %v217_v21 }
  0xf9   :  { %v180_v11 = vpop.xlane.xlu0 %179 }
  0xfa   :  { %512 = vrcp.f32 %v180_v11  ;;  %v257_v25 = vand.u32 2147483647, %v180_v11  ;;  %v259_v35 = vand.u32 2147483648, %v180_v11  ;;  %vm253_vm5 = vweird.f32 %v180_v11 }
  0xfb   :  { %v174_v23 = vpop.xlane.xlu1 %173 }
  0xfc   :  { %514 = vrcp.f32 %v174_v23  ;;  %v229_v29 = vand.u32 2147483647, %v174_v23  ;;  %v231_v31 = vand.u32 2147483648, %v174_v23  ;;  %vm225_vm3 = vweird.f32 %v174_v23 }
  0xfd   :  { %vm812_vm7 = vcmp.eq.f32.partialorder %v257_v25, 8.507059e+37  ;;  %v260_v45 = vor.u32 1.1754944e-38, %v259_v35 }
  0xfe   :  { %vm808_vm6 = vcmp.eq.f32.partialorder %v229_v29, 8.507059e+37  ;;  %v232_v50 = vor.u32 1.1754944e-38, %v231_v31 }
 0x100   :  { %v513_v18 = vpop.eup %512 }
 0x101   :  { %v249_v20 = vmul.f32 %v513_v18, %v180_v11  ;;  %v799_v24 = vpop.xlane.xlu0 %188  ;;  %vm254_vm2 = vweird.f32 %v513_v18 }
 0x102   :  { %v515_v19 = vpop.eup %514  ;;  %516 = vrcp.f32 %v799_v24  ;;  %vm255_vm8 = vmor %vm253_vm5, %vm254_vm2  ;;  %vm295_vm10 = vweird.f32 %v799_v24  ;;  %v301_v14 = vand.u32 2147483648, %v799_v24 }
 0x103   :  { %v221_v6 = vmul.f32 %v515_v19, %v174_v23  ;;  %v801_v26 = vpop.xlane.xlu1 %182  ;;  %v803_v28 = vpop.xlane.xlu2 %176  ;;  %v250_v34 = vsub.f32 1.0, %v249_v20  ;;  %vm226_vm4 = vweird.f32 %v515_v19 }
 0x104   :  { %518 = vrcp.f32 %v801_v26  ;;  %vm267_vm9 = vweird.f32 %v801_v26  ;;  %vm227_vm11 = vmor %vm225_vm3, %vm226_vm4  ;;  %v271_v43 = vand.u32 2147483647, %v801_v26  ;;  %v273_v52 = vand.u32 2147483648, %v801_v26 }
 0x105   :  { %v222_v30 = vsub.f32 1.0, %v221_v6  ;;  %520 = vrcp.f32 %v803_v28  ;;  %v251_v32 = vmul.f32 %v513_v18, %v250_v34  ;;  %v243_v63 = vand.u32 2147483647, %v803_v28 }
 0x106   :  { %v245_v54 = vand.u32 2147483648, %v803_v28  ;;  %vm854_vm14 = vcmp.eq.f32.partialorder %v271_v43, 8.507059e+37  ;;  %vm239_vm15 = vweird.f32 %v803_v28  ;;  %v302_v29 = vor.u32 1.1754944e-38, %v301_v14 }
 0x107   :  { %v223_v37 = vmul.f32 %v515_v19, %v222_v30  ;;  %v252_v39 = vadd.f32 %v513_v18, %v251_v32  ;;  %vm871_vm4 = vcmp.eq.f32.partialorder %v243_v63, 8.507059e+37 }
 0x108   :  { %v816_v47 = vpop.eup %516 }
 0x109   :  { %v224_v48 = vadd.f32 %v515_v19, %v223_v37  ;;  %v256_v42 = vsel %vm255_vm8, %v513_v18, %v252_v39  ;;  %v291_v53 = vmul.f32 %v816_v47, %v799_v24  ;;  %vm296_vm12 = vweird.f32 %v816_v47  ;;  %v846_v15 = vpop.xlane.xlu0 %197 }
 0x10a   :  { %v519_v51 = vpop.eup %518  ;;  %v261_v59 = vsel %vm812_vm7, %v260_v45, %v256_v42  ;;  %v274_v18 = vor.u32 1.1754944e-38, %v273_v52  ;;  %vm864_vm2 = vmor %vm295_vm10, %vm296_vm12  ;;  %v343_v63 = vand.u32 2147483648, %v846_v15 }
 0x10b   :  { %v521_v57 = vpop.eup %520  ;;  %v228_v58 = vsel %vm227_vm11, %v515_v19, %v224_v48  ;;  %v263_v60 = vmul.f32 %v519_v51, %v801_v26  ;;  %v828_v0 = vpop.xlane.xlu2 %185  ;;  %v446_v3 = vmul.f32 %v724_v17, %v261_v59  ;;  %v292_v12 = vsub.f32 1.0, %v291_v53 }
 0x10c   :  { %v233_v2 = vsel %vm808_vm6, %v232_v50, %v228_v58  ;;  %v235_v4 = vmul.f32 %v521_v57, %v803_v28  ;;  %v835_v55 = vpop.xlane.xlu1 %191  ;;  %522 = vrcp.f32 %v828_v0  ;;  %v299_v17 = vand.u32 2147483647, %v799_v24 }
 0x10d   :  { %v444_v56 = vmul.f32 %v727_v22, %v233_v2  ;;  %v264_v7 = vsub.f32 1.0, %v263_v60  ;;  %462 = vst.msk [vmem:[%s1062_s2 + $0x10] sm:$0xff] %vm75_vm0, %v446_v3  ;;  %vm268_vm13 = vweird.f32 %v519_v51  ;;  %v293_v10 = vmul.f32 %v816_v47, %v292_v12 }
 0x10e   :  { %v236_v13 = vsub.f32 1.0, %v235_v4  ;;  %524 = vrcp.f32 %v835_v55  ;;  %vm240_vm1 = vweird.f32 %v521_v57  ;;  %vm269_vm3 = vmor %vm267_vm9, %vm268_vm13  ;;  %v246_v28 = vor.u32 1.1754944e-38, %v245_v54 }
 0x10f   :  { %460 = vst.msk [vmem:[%s1062_s2] sm:$0xff] %vm75_vm0, %v444_v56  ;;  %v265_v22 = vmul.f32 %v519_v51, %v264_v7  ;;  %v294_v19 = vadd.f32 %v816_v47, %v293_v10  ;;  %526 = vrcp.f32 %v846_v15  ;;  %vm241_vm5 = vmor %vm239_vm15, %vm240_vm1  ;;  %vm300_vm6 = vcmp.eq.f32.partialorder %v299_v17, 8.507059e+37 }
 0x110   :  { %v237_v11 = vmul.f32 %v521_v57, %v236_v13  ;;  %v285_v30 = vand.u32 2147483647, %v828_v0  ;;  %vm281_vm7 = vweird.f32 %v828_v0  ;;  %vm309_vm9 = vweird.f32 %v835_v55 }
 0x111   :  { %v266_v23 = vadd.f32 %v519_v51, %v265_v22  ;;  %v298_v24 = vsel %vm864_vm2, %v816_v47, %v294_v19  ;;  %v910_v58 = vpop.xlane.xlu0 %206  ;;  %v315_v59 = vand.u32 2147483648, %v835_v55  ;;  %v341_v60 = vand.u32 2147483647, %v846_v15 }
 0x112   :  { %v238_v6 = vadd.f32 %v521_v57, %v237_v11  ;;  %v523_v34 = vpop.eup %522  ;;  %v303_v32 = vsel %vm300_vm6, %v302_v29, %v298_v24  ;;  %vm898_vm8 = vcmp.eq.f32.partialorder %v285_v30, 8.507059e+37  ;;  %v344_v10 = vor.u32 1.1754944e-38, %v343_v63 }
 0x113   :  { %v270_v35 = vsel %vm269_vm3, %v519_v51, %v266_v23  ;;  %v277_v37 = vmul.f32 %v523_v34, %v828_v0  ;;  %v882_v38 = vpop.xlane.xlu2 %194  ;;  %v449_v47 = vmul.f32 %v735_v27, %v303_v32  ;;  %v287_v51 = vand.u32 2147483648, %v828_v0 }
 0x114   :  { %v275_v26 = vsel %vm854_vm14, %v274_v18, %v270_v35  ;;  %v242_v31 = vsel %vm241_vm5, %v521_v57, %v238_v6  ;;  %v525_v39 = vpop.eup %524  ;;  %v892_v43 = vpop.xlane.xlu1 %200  ;;  %v313_v27 = vand.u32 2147483647, %v835_v55  ;;  %528 = vrcp.f32 %v882_v38 }
 0x115   :  { %v447_v40 = vmul.f32 %v738_v33, %v275_v26  ;;  %v247_v45 = vsel %vm871_vm4, %v246_v28, %v242_v31  ;;  %v278_v50 = vsub.f32 1.0, %v277_v37  ;;  %v305_v42 = vmul.f32 %v525_v39, %v835_v55  ;;  %v527_v52 = vpop.eup %526  ;;  %465 = vst.msk [vmem:[%s1062_s2 + $0x28] sm:$0xff] %vm75_vm0, %v449_v47 }
 0x116   :  { %v445_v48 = vmul.f32 %v742_v36, %v247_v45  ;;  %vm282_vm10 = vweird.f32 %v523_v34  ;;  %v333_v57 = vmul.f32 %v527_v52, %v846_v15  ;;  %530 = vrcp.f32 %v892_v43 }
 0x117   :  { %463 = vst.msk [vmem:[%s1062_s2 + $0x18] sm:$0xff] %vm75_vm0, %v447_v40  ;;  %v279_v36 = vmul.f32 %v523_v34, %v278_v50  ;;  %v306_v53 = vsub.f32 1.0, %v305_v42  ;;  %vm310_vm11 = vweird.f32 %v525_v39  ;;  %vm283_vm12 = vmor %vm281_vm7, %vm282_vm10  ;;  %v288_v54 = vor.u32 1.1754944e-38, %v287_v51 }
 0x118   :  { %461 = vst.msk [vmem:[%s1062_s2 + $0x8] sm:$0xff] %vm75_vm0, %v445_v48  ;;  %v334_v4 = vsub.f32 1.0, %v333_v57  ;;  %vm922_vm13 = vcmp.eq.f32.partialorder %v313_v27, 8.507059e+37  ;;  %vm337_vm14 = vweird.f32 %v846_v15  ;;  %532 = vrcp.f32 %v910_v58  ;;  %vm311_vm1 = vmor %vm309_vm9, %vm310_vm11 }
 0x119   :  { %v280_v2 = vadd.f32 %v523_v34, %v279_v36  ;;  %v307_v3 = vmul.f32 %v525_v39, %v306_v53  ;;  %vm338_vm15 = vweird.f32 %v527_v52  ;;  %v316_v0 = vor.u32 1.1754944e-38, %v315_v59  ;;  %v976_v47 = vpop.xlane.xlu0 %215 }
 0x11a   :  { %v335_v13 = vmul.f32 %v527_v52, %v334_v4  ;;  %v529_v17 = vpop.eup %528  ;;  %vm932_vm2 = vcmp.eq.f32.partialorder %v341_v60, 8.507059e+37  ;;  %vm339_vm3 = vmor %vm337_vm14, %vm338_vm15  ;;  %vm323_vm4 = vweird.f32 %v882_v38  ;;  %v327_v55 = vand.u32 2147483647, %v882_v38 }
 0x11b   :  { %v284_v7 = vsel %vm283_vm12, %v523_v34, %v280_v2  ;;  %v308_v12 = vadd.f32 %v525_v39, %v307_v3  ;;  %v319_v18 = vmul.f32 %v529_v17, %v882_v38  ;;  %v938_v19 = vpop.xlane.xlu2 %203  ;;  %v329_v25 = vand.u32 2147483648, %v882_v38 }
 0x11c   :  { %v289_v14 = vsel %vm898_vm8, %v288_v54, %v284_v7  ;;  %v336_v23 = vadd.f32 %v527_v52, %v335_v13  ;;  %v531_v20 = vpop.eup %530  ;;  %vm324_vm5 = vweird.f32 %v529_v17  ;;  %vm351_vm6 = vweird.f32 %v892_v43  ;;  %v957_v24 = vpop.xlane.xlu1 %209 }
 0x11d   :  { %v448_v21 = vmul.f32 %v749_v41, %v289_v14  ;;  %v312_v11 = vsel %vm311_vm1, %v525_v39, %v308_v12  ;;  %v320_v29 = vsub.f32 1.0, %v319_v18  ;;  %v347_v34 = vmul.f32 %v531_v20, %v892_v43  ;;  %vm325_vm9 = vmor %vm323_vm4, %vm324_vm5 }
 0x11e   :  { %v317_v6 = vsel %vm922_vm13, %v316_v0, %v312_v11  ;;  %v340_v28 = vsel %vm339_vm3, %v527_v52, %v336_v23  ;;  %v533_v35 = vpop.eup %532  ;;  %534 = vrcp.f32 %v938_v19  ;;  %vm965_vm7 = vcmp.eq.f32.partialorder %v327_v55, 8.507059e+37 }
 0x11f   :  { %464 = vst.msk [vmem:[%s1062_s2 + $0x20] sm:$0xff] %vm75_vm0, %v448_v21  ;;  %v450_v41 = vmul.f32 %v755_v49, %v317_v6  ;;  %v345_v15 = vsel %vm932_vm2, %v344_v10, %v340_v28  ;;  %v321_v30 = vmul.f32 %v529_v17, %v320_v29  ;;  %v348_v26 = vsub.f32 1.0, %v347_v34 }
 0x120   :  { %v452_v49 = vmul.f32 %v752_v46, %v345_v15  ;;  %v375_v31 = vmul.f32 %v533_v35, %v910_v58  ;;  %vm352_vm8 = vweird.f32 %v531_v20  ;;  %v355_v37 = vand.u32 2147483647, %v892_v43 }
 0x121   :  { %466 = vst.msk [vmem:[%s1062_s2 + $0x30] sm:$0xff] %vm75_vm0, %v450_v41  ;;  %v357_v39 = vand.u32 2147483648, %v892_v43  ;;  %v322_v40 = vadd.f32 %v529_v17, %v321_v30  ;;  %v349_v46 = vmul.f32 %v531_v20, %v348_v26  ;;  %536 = vrcp.f32 %v957_v24  ;;  %vm353_vm12 = vmor %vm351_vm6, %vm352_vm8 }
 0x122   :  { %468 = vst.msk [vmem:[%s1062_s2 + $0x40] sm:$0xff] %vm75_vm0, %v452_v49  ;;  %v376_v45 = vsub.f32 1.0, %v375_v31  ;;  %v330_v48 = vor.u32 1.1754944e-38, %v329_v25  ;;  %vm379_vm10 = vweird.f32 %v910_v58  ;;  %v383_v50 = vand.u32 2147483647, %v910_v58 }
 0x123   :  { %v385_v51 = vand.u32 2147483648, %v910_v58  ;;  %v326_v42 = vsel %vm325_vm9, %v529_v17, %v322_v40  ;;  %v350_v52 = vadd.f32 %v531_v20, %v349_v46  ;;  %vm380_vm11 = vweird.f32 %v533_v35  ;;  %v994_v3 = vpop.xlane.xlu2 %212 }
 0x124   :  { %v377_v33 = vmul.f32 %v533_v35, %v376_v45  ;;  %v535_v27 = vpop.eup %534  ;;  %v331_v36 = vsel %vm965_vm7, %v330_v48, %v326_v42  ;;  %vm356_vm13 = vcmp.eq.f32.partialorder %v355_v37, 8.507059e+37  ;;  %v358_v38 = vor.u32 1.1754944e-38, %v357_v39  ;;  %vm381_vm14 = vmor %vm379_vm10, %vm380_vm11  ;;  %v1004_v13 = vpop.xlane.xlu1 %218 }
 0x125   :  { %538 = vrcp.f32 %v976_v47  ;;  %v451_v53 = vmul.f32 %v763_v44, %v331_v36  ;;  %v354_v57 = vsel %vm353_vm12, %v531_v20, %v350_v52  ;;  %v361_v60 = vmul.f32 %v535_v27, %v938_v19 }
 0x126   :  { %v378_v59 = vadd.f32 %v533_v35, %v377_v33  ;;  %v359_v63 = vsel %vm356_vm13, %v358_v38, %v354_v57  ;;  %vm384_vm15 = vcmp.eq.f32.partialorder %v383_v50, 8.507059e+37  ;;  %v386_v2 = vor.u32 1.1754944e-38, %v385_v51 }
 0x127   :  { %v537_v43 = vpop.eup %536  ;;  %467 = vst.msk [vmem:[%s1062_s2 + $0x38] sm:$0xff] %vm75_vm0, %v451_v53  ;;  %v453_v44 = vmul.f32 %v770_v1, %v359_v63  ;;  %v362_v54 = vsub.f32 1.0, %v361_v60  ;;  %v369_v56 = vand.u32 2147483647, %v938_v19  ;;  %v371_v58 = vand.u32 2147483648, %v938_v19 }
 0x128   :  { %v382_v4 = vsel %vm381_vm14, %v533_v35, %v378_v59  ;;  %v389_v12 = vmul.f32 %v537_v43, %v957_v24  ;;  %vm366_vm1 = vweird.f32 %v535_v27  ;;  %540 = vrcp.f32 %v994_v3 }
 0x129   :  { %v387_v7 = vsel %vm384_vm15, %v386_v2, %v382_v4  ;;  %469 = vst.msk [vmem:[%s1062_s2 + $0x48] sm:$0xff] %vm75_vm0, %v453_v44  ;;  %v363_v14 = vmul.f32 %v535_v27, %v362_v54  ;;  %vm365_vm2 = vweird.f32 %v938_v19  ;;  %v399_v22 = vand.u32 2147483648, %v957_v24 }
 0x12a   :  { %v455_v17 = vmul.f32 %v767_v61, %v387_v7  ;;  %v390_v0 = vsub.f32 1.0, %v389_v12  ;;  %vm370_vm3 = vcmp.eq.f32.partialorder %v369_v56, 8.507059e+37  ;;  %542 = vrcp.f32 %v1004_v13  ;;  %vm367_vm4 = vmor %vm365_vm2, %vm366_vm1 }
 0x12b   :  { %v539_v1 = vpop.eup %538  ;;  %v364_v10 = vadd.f32 %v535_v27, %v363_v14  ;;  %v372_v61 = vor.u32 1.1754944e-38, %v371_v58  ;;  %vm394_vm5 = vweird.f32 %v537_v43  ;;  %v397_v23 = vand.u32 2147483647, %v957_v24 }
 0x12c   :  { %471 = vst.msk [vmem:[%s1062_s2 + $0x58] sm:$0xff] %vm75_vm0, %v455_v17  ;;  %v417_v21 = vmul.f32 %v539_v1, %v976_v47  ;;  %v391_v11 = vmul.f32 %v537_v43, %v390_v0  ;;  %vm393_vm6 = vweird.f32 %v957_v24  ;;  %vm421_vm7 = vweird.f32 %v976_v47 }
 0x12d   :  { %v368_v18 = vsel %vm367_vm4, %v535_v27, %v364_v10  ;;  %v400_v55 = vor.u32 1.1754944e-38, %v399_v22  ;;  %v427_v25 = vand.u32 2147483648, %v976_v47  ;;  %vm395_vm8 = vmor %vm393_vm6, %vm394_vm5  ;;  %vm422_vm9 = vweird.f32 %v539_v1 }
 0x12e   :  { %v418_v19 = vsub.f32 1.0, %v417_v21  ;;  %v373_v20 = vsel %vm370_vm3, %v372_v61, %v368_v18  ;;  %v392_v6 = vadd.f32 %v537_v43, %v391_v11  ;;  %v541_v41 = vpop.eup %540  ;;  %v425_v34 = vand.u32 2147483647, %v976_v47  ;;  %vm423_vm11 = vmor %vm421_vm7, %vm422_vm9 }
 0x12f   :  { %v454_v28 = vmul.f32 %v778_v5, %v373_v20  ;;  %vm398_vm10 = vcmp.eq.f32.partialorder %v397_v23, 8.507059e+37  ;;  %v403_v15 = vmul.f32 %v541_v41, %v994_v3  ;;  %v428_v5 = vor.u32 1.1754944e-38, %v427_v25 }
 0x130   :  { %v419_v29 = vmul.f32 %v539_v1, %v418_v19  ;;  %v396_v35 = vsel %vm395_vm8, %v537_v43, %v392_v6  ;;  %v543_v24 = vpop.eup %542  ;;  %vm426_vm12 = vcmp.eq.f32.partialorder %v425_v34, 8.507059e+37  ;;  %v411_v39 = vand.u32 2147483647, %v994_v3 }
 0x131   :  { %470 = vst.msk [vmem:[%s1062_s2 + $0x50] sm:$0xff] %vm75_vm0, %v454_v28  ;;  %v401_v49 = vsel %vm398_vm10, %v400_v55, %v396_v35  ;;  %v404_v31 = vsub.f32 1.0, %v403_v15  ;;  %v431_v32 = vmul.f32 %v543_v24, %v1004_v13  ;;  %v413_v40 = vand.u32 2147483648, %v994_v3 }
 0x132   :  { %v420_v30 = vadd.f32 %v539_v1, %v419_v29  ;;  %v456_v26 = vmul.f32 %v783_v9, %v401_v49  ;;  %vm408_vm13 = vweird.f32 %v541_v41  ;;  %vm407_vm14 = vweird.f32 %v994_v3 }
 0x133   :  { %v405_v9 = vmul.f32 %v541_v41, %v404_v31  ;;  %v432_v45 = vsub.f32 1.0, %v431_v32  ;;  %v441_v48 = vand.u32 2147483648, %v1004_v13  ;;  %vm436_vm15 = vweird.f32 %v543_v24  ;;  %vm409_vm1 = vmor %vm407_vm14, %vm408_vm13 }
 0x134   :  { %v424_v37 = vsel %vm423_vm11, %v539_v1, %v420_v30  ;;  %472 = vst.msk [vmem:[%s1062_s2 + $0x60] sm:$0xff] %vm75_vm0, %v456_v26  ;;  %v439_v42 = vand.u32 2147483647, %v1004_v13  ;;  %v414_v52 = vor.u32 1.1754944e-38, %v413_v40  ;;  %vm412_vm2 = vcmp.eq.f32.partialorder %v411_v39, 8.507059e+37 }
 0x135   :  { %v429_v46 = vsel %vm426_vm12, %v428_v5, %v424_v37  ;;  %v406_v50 = vadd.f32 %v541_v41, %v405_v9  ;;  %v433_v51 = vmul.f32 %v543_v24, %v432_v45  ;;  %vm435_vm3 = vweird.f32 %v1004_v13 }
 0x136   :  { %v458_v47 = vmul.f32 %v781_v8, %v429_v46  ;;  %vm437_vm4 = vmor %vm435_vm3, %vm436_vm15  ;;  %v442_v36 = vor.u32 1.1754944e-38, %v441_v48  ;;  %vm440_vm5 = vcmp.eq.f32.partialorder %v439_v42, 8.507059e+37 }
 0x137   :  { %v410_v33 = vsel %vm409_vm1, %v541_v41, %v406_v50  ;;  %v434_v27 = vadd.f32 %v543_v24, %v433_v51 }
 0x138   :  { %474 = vst.msk [vmem:[%s1062_s2 + $0x70] sm:$0xff] %vm75_vm0, %v458_v47  ;;  %v415_v8 = vsel %vm412_vm2, %v414_v52, %v410_v33 }
 0x139   :  { %v457_v38 = vmul.f32 %v791_v62, %v415_v8  ;;  %v438_v53 = vsel %vm437_vm4, %v543_v24, %v434_v27 }
 0x13a   :  { %v443_v57 = vsel %vm440_vm5, %v442_v36, %v438_v53 }
 0x13b   :  { %473 = vst.msk [vmem:[%s1062_s2 + $0x68] sm:$0xff] %vm75_vm0, %v457_v38  ;;  %v459_v59 = vmul.f32 %v793_v16, %v443_v57 }
 0x13d   :  { %475 = vst.msk [vmem:[%s1062_s2 + $0x78] sm:$0xff] %vm75_vm0, %v459_v59 }

</bundles_post_ra>
